<compile_context>
chip_gen: v7x
topology: tpu7x:2x2x1
jax: 0.10.0
libtpu: 0.0.40
codegen_flags: <defaults>
</compile_context>

<pallas_src>
import functools

import jax
import jax.numpy as jnp
from jax import lax
from jax.experimental import pallas as pl
from jax.experimental.pallas import tpu as pltpu

EPS = 1e-5          # nn.BatchNorm1d default eps
NEG_SLOPE = 0.01    # nn.LeakyReLU default negative_slope
LANE = 128
SUBLANE = 8


def _round_up(n, m):
    return ((n + m - 1) // m) * m


def _vmem_capacity_bytes():
    """Physical VMEM per core; conservative fallback if the query fails."""
    try:
        return int(pltpu.get_tpu_info().vmem_capacity_bytes)
    except Exception:
        return 64 * 1024 * 1024        # v7x-sized fallback: safe everywhere


def _bn_leaky(h, gamma, beta, n_valid_rows):
    """Training-mode BatchNorm1d + LeakyReLU over the batch (row) axis, f32.

    Single fused pass (sum + sum-of-squares together), biased variance.
    Rows >= n_valid_rows (batch padding) are excluded from the statistics.
    """
    padded_rows = h.shape[0]
    if padded_rows != n_valid_rows:
        row = lax.broadcasted_iota(jnp.int32, h.shape, 0)
        hm = jnp.where(row < n_valid_rows, h, 0.0)
    else:
        hm = h
    inv_n = jnp.float32(1.0 / n_valid_rows)
    s = jnp.sum(hm, axis=0, keepdims=True)
    ss = jnp.sum(hm * hm, axis=0, keepdims=True)
    mean = s * inv_n
    var = jnp.maximum(ss * inv_n - mean * mean, 0.0)   # clamp E[x^2]-E[x]^2
    h = (h - mean) * lax.rsqrt(var + EPS) * gamma + beta
    return jnp.where(h >= 0, h, NEG_SLOPE * h)


# ---------------------------------------------------------------------------
# Kernel 1: fully fused, single grid step (everything VMEM resident).
# ---------------------------------------------------------------------------
def _disc_fused_kernel(x_ref, w1_ref, bn1_ref, w2_ref, bn2_ref, w3_ref, b3_ref,
                       o_ref, *, batch):
    bn1 = bn1_ref[...]                                   # (3, Hp): [bias; gamma; beta]
    h1 = jnp.dot(x_ref[...], w1_ref[...],
                 preferred_element_type=jnp.float32) + bn1[0:1]
    h1 = _bn_leaky(h1, bn1[1:2], bn1[2:3], batch)

    bn2 = bn2_ref[...]
    h2 = jnp.dot(h1.astype(jnp.bfloat16), w2_ref[...],
                 preferred_element_type=jnp.float32) + bn2[0:1]
    h2 = _bn_leaky(h2, bn2[1:2], bn2[2:3], batch)

    out = jnp.dot(h2.astype(jnp.bfloat16), w3_ref[...],
                  preferred_element_type=jnp.float32) + b3_ref[...]
    o_ref[...] = out.astype(o_ref.dtype)


# ---------------------------------------------------------------------------
# Kernel 2: reduction grid over hidden-dim tiles (for large hidden sizes).
# ---------------------------------------------------------------------------
def _disc_tiled_kernel(x_ref, w1_ref, bn1_ref, w2_ref, bn2_ref, w3_ref, b3_ref,
                       o_ref, acc2_ref, *, batch):
    j = pl.program_id(0)

    @pl.when(j == 0)
    def _():
        acc2_ref[...] = jnp.zeros_like(acc2_ref)

    # Layer 1 for this hidden tile (BN stats are over the full resident batch,
    # so per-feature-tile stats are exact).
    bn1 = bn1_ref[...]                                   # (3, th)
    h1 = jnp.dot(x_ref[...], w1_ref[...],
                 preferred_element_type=jnp.float32) + bn1[0:1]
    h1 = _bn_leaky(h1, bn1[1:2], bn1[2:3], batch)

    # Layer 2 partial matmul: accumulate this hidden tile's contribution.
    acc2_ref[...] += jnp.dot(h1.astype(jnp.bfloat16), w2_ref[...],
                             preferred_element_type=jnp.float32)

    # Finalize on the last hidden tile.
    @pl.when(j == pl.num_programs(0) - 1)
    def _():
        bn2 = bn2_ref[...]                               # (3, Hp)
        h2 = acc2_ref[...] + bn2[0:1]
        h2 = _bn_leaky(h2, bn2[1:2], bn2[2:3], batch)
        out = jnp.dot(h2.astype(jnp.bfloat16), w3_ref[...],
                      preferred_element_type=jnp.float32) + b3_ref[...]
        o_ref[...] = out.astype(o_ref.dtype)


# ---------------------------------------------------------------------------
# Parameter preparation (do this ONCE; do not re-pad weights per forward call)
# ---------------------------------------------------------------------------
def pad_params(params):
    """Pad weights to lane multiples, cast matmul operands to bf16 and pack
    BN params into (3, Hp) arrays.  Returns (padded_params, (din, H, C))."""
    din, H = params["w1"].shape
    C = params["w3"].shape[1]
    Dp, Hp, Cp = _round_up(din, LANE), _round_up(H, LANE), _round_up(C, LANE)

    def pad2(a, r, c, dtype):
        return jnp.pad(a, ((0, r - a.shape[0]), (0, c - a.shape[1]))).astype(dtype)

    padded = {
        "w1": pad2(params["w1"], Dp, Hp, jnp.bfloat16),
        "w2": pad2(params["w2"], Hp, Hp, jnp.bfloat16),
        "w3": pad2(params["w3"], Hp, Cp, jnp.bfloat16),
        "bn1": jnp.concatenate([pad2(params["b1"], 1, Hp, jnp.float32),
                                pad2(params["g1"], 1, Hp, jnp.float32),
                                pad2(params["be1"], 1, Hp, jnp.float32)], axis=0),
        "bn2": jnp.concatenate([pad2(params["b2"], 1, Hp, jnp.float32),
                                pad2(params["g2"], 1, Hp, jnp.float32),
                                pad2(params["be2"], 1, Hp, jnp.float32)], axis=0),
        "b3": pad2(params["b3"], 1, Cp, jnp.float32),
    }
    return padded, (din, H, C)


def discriminator_forward(x, padded, dims, *, force_path=None, hidden_tile=None):
    """x: (B, input_dim) f32 -> (B, n_classes) f32.  `padded` from pad_params."""
    din, H, C = dims
    B = x.shape[0]
    Dp, Hp = padded["w1"].shape
    Cp = padded["w3"].shape[1]
    Bp = _round_up(B, SUBLANE)

    # Only x is padded per call (weights are pre-padded / pre-cast once).
    xp = jnp.pad(x, ((0, Bp - B), (0, Dp - din))).astype(jnp.bfloat16)

    vmem_cap = _vmem_capacity_bytes()
    # ~100 MiB on 128-MiB chips (v5e/v6e), ~50 MiB on 64-MiB chips (v7x).
    vmem_limit = min(100 * 1024 * 1024, int(vmem_cap * 0.78))

    resident = lambda j: (0, 0)   # same block every step -> DMA'd once, VMEM-resident

    # Rough VMEM budgets (default 2x buffering per BlockSpec + f32 temporaries).
    fused_bytes = (2 * (Bp * Dp * 2 + Dp * Hp * 2 + 3 * Hp * 4 + Hp * Hp * 2
                        + 3 * Hp * 4 + Hp * Cp * 2 + Cp * 4 + Bp * Cp * 4)
                   + 2 * Bp * Hp * 4)

    def tiled_bytes(t):
        return (2 * (Bp * Dp * 2 + Dp * t * 2 + 3 * t * 4 + t * Hp * 2
                     + 3 * Hp * 4 + Hp * Cp * 2 + Cp * 4 + Bp * Cp * 4)
                + Bp * Hp * 4 + 2 * Bp * t * 4)

    use_fused = fused_bytes <= int(0.6 * vmem_limit)
    if force_path == "fused":
        use_fused = True
    elif force_path == "tiled":
        use_fused = False

    if use_fused:
        grid_spec = pltpu.PrefetchScalarGridSpec(
            num_scalar_prefetch=0,
            grid=(1,),
            in_specs=[
                pl.BlockSpec((Bp, Dp), resident),   # x
                pl.BlockSpec((Dp, Hp), resident),   # w1
                pl.BlockSpec((3, Hp), resident),    # bn1 (bias, gamma, beta)
                pl.BlockSpec((Hp, Hp), resident),   # w2
                pl.BlockSpec((3, Hp), resident),    # bn2
                pl.BlockSpec((Hp, Cp), resident),   # w3
                pl.BlockSpec((1, Cp), resident),    # b3
            ],
            out_specs=pl.BlockSpec((Bp, Cp), resident),
        )
        kernel = functools.partial(_disc_fused_kernel, batch=B)
    else:
        # Prefer 256-wide hidden tiles (fills a 256x256 MXU, halves accumulator
        # RMW passes); fall back to 128 if VMEM is tight or 256 doesn't divide.
        if hidden_tile is not None:
            th = hidden_tile
        else:
            th = 256 if (Hp % 256 == 0 and tiled_bytes(256) <= int(0.8 * vmem_limit)) else 128
        th = min(th, Hp)
        assert Hp % th == 0
        n_tiles = Hp // th

        col_tile = lambda j: (0, j)    # layer-1 output columns
        row_tile = lambda j: (j, 0)    # layer-2 input rows

        grid_spec = pltpu.PrefetchScalarGridSpec(
            num_scalar_prefetch=0,
            grid=(n_tiles,),
            in_specs=[
                pl.BlockSpec((Bp, Dp), resident),   # x (full batch resident: exact BN stats)
                pl.BlockSpec((Dp, th), col_tile),   # w1 tile (double-buffered)
                pl.BlockSpec((3, th), col_tile),    # bn1 tile
                pl.BlockSpec((th, Hp), row_tile),   # w2 tile (double-buffered)
                pl.BlockSpec((3, Hp), resident),    # bn2
                pl.BlockSpec((Hp, Cp), resident),   # w3
                pl.BlockSpec((1, Cp), resident),    # b3
            ],
            out_specs=pl.BlockSpec((Bp, Cp), resident),   # lane-dense, written once
            scratch_shapes=[pltpu.VMEM((Bp, Hp), jnp.float32)],   # layer-2 accumulator
        )
        kernel = functools.partial(_disc_tiled_kernel, batch=B)

    out_padded = pl.pallas_call(
        kernel,
        out_shape=jax.ShapeDtypeStruct((Bp, Cp), jnp.float32),
        grid_spec=grid_spec,
        compiler_params=pltpu.CompilerParams(
            dimension_semantics=("arbitrary",),   # hidden-tile axis is a reduction
            vmem_limit_bytes=vmem_limit,
        ),
    )(xp, padded["w1"], padded["bn1"], padded["w2"], padded["bn2"],
      padded["w3"], padded["b3"])

    return out_padded[:B, :C]


# ---------------------------------------------------------------------------
# Init / reference / test
# ---------------------------------------------------------------------------
def init_params(key, input_dim, hidden_dim, n_classes):
    """Deterministic PyTorch-style init: U(-1/sqrt(fan_in), 1/sqrt(fan_in))."""
    ks = jax.random.split(key, 6)

    def lin(kw, kb, fan_in, fan_out):
        bound = 1.0 / (fan_in ** 0.5)
        w = jax.random.uniform(kw, (fan_in, fan_out), jnp.float32, -bound, bound)
        b = jax.random.uniform(kb, (1, fan_out), jnp.float32, -bound, bound)
        return w, b

    w1, b1 = lin(ks[0], ks[1], input_dim, hidden_dim)
    w2, b2 = lin(ks[2], ks[3], hidden_dim, hidden_dim)
    w3, b3 = lin(ks[4], ks[5], hidden_dim, n_classes)
    ones = jnp.ones((1, hidden_dim), jnp.float32)
    zeros = jnp.zeros((1, hidden_dim), jnp.float32)
    return {"w1": w1, "b1": b1, "g1": ones, "be1": zeros,
            "w2": w2, "b2": b2, "g2": ones, "be2": zeros,
            "w3": w3, "b3": b3}


def reference_forward(x, p):
    """Plain-JAX reference mirroring the PyTorch forward (training-mode BN).

    Weights and x go through the same bf16 quantization the kernel sees, but
    all arithmetic is f32; the only remaining kernel difference is the bf16
    cast of intermediate activations at the MXU inputs.
    """
    q = lambda a: a.astype(jnp.bfloat16).astype(jnp.float32)

    def bn_lrelu(h, g, be):
        m = jnp.mean(h, axis=0, keepdims=True)
        v = jnp.mean((h - m) ** 2, axis=0, keepdims=True)
        h = (h - m) / jnp.sqrt(v + EPS) * g + be
        return jnp.where(h >= 0, h, NEG_SLOPE * h)

    h = q(x) @ q(p["w1"]) + p["b1"]
    h = bn_lrelu(h, p["g1"], p["be1"])
    h = h @ q(p["w2"]) + p["b2"]
    h = bn_lrelu(h, p["g2"], p["be2"])
    return h @ q(p["w3"]) + p["b3"]


if __name__ == "__main__":
    # Discriminator config: input_dim -> hidden -> hidden -> n_classes.
    # Small but deliberately non-aligned shapes to exercise batch padding /
    # masking, feature padding, the fused path, and the tiled reduction path.
    batch, input_dim, hidden_dim, n_classes = 12, 48, 256, 10

    key = jax.random.PRNGKey(0)
    k_x, k_p = jax.random.split(key)
    x = jax.random.normal(k_x, (batch, input_dim), jnp.float32)
    params = init_params(k_p, input_dim, hidden_dim, n_classes)

    # Pad / cast weights ONCE (cached), not per forward call.
    padded, dims = pad_params(params)

    ref = reference_forward(x, params)

    # Path 1: auto (fused single-step kernel at these shapes).
    out_fused = jax.block_until_ready(discriminator_forward(x, padded, dims))
    assert out_fused.shape == (batch, n_classes)
    err_f = float(jnp.max(jnp.abs(out_fused - ref)))
    assert jnp.allclose(out_fused, ref, atol=5e-2, rtol=5e-2), (
        f"fused path mismatch vs reference (max abs err {err_f})")

    # Path 2: forced tiled kernel with a 128-wide hidden tile (2 grid steps),
    # exercising the accumulator / reduction-grid code path.
    out_tiled = jax.block_until_ready(
        discriminator_forward(x, padded, dims, force_path="tiled", hidden_tile=128))
    err_t = float(jnp.max(jnp.abs(out_tiled - ref)))
    assert jnp.allclose(out_tiled, ref, atol=5e-2, rtol=5e-2), (
        f"tiled path mismatch vs reference (max abs err {err_t})")

    print("KERNEL_OK")
</pallas_src>

<mosaic_0001>
module attributes {stable_mosaic.version = 11 : i64} {
  func.func @_disc_fused_kernel(%arg0: i32, %arg1: memref<16x128xbf16, #tpu.memory_space<vmem>>, %arg2: memref<128x256xbf16, #tpu.memory_space<vmem>>, %arg3: memref<3x256xf32, #tpu.memory_space<vmem>>, %arg4: memref<256x256xbf16, #tpu.memory_space<vmem>>, %arg5: memref<3x256xf32, #tpu.memory_space<vmem>>, %arg6: memref<256x128xbf16, #tpu.memory_space<vmem>>, %arg7: memref<1x128xf32, #tpu.memory_space<vmem>>, %arg8: memref<16x128xf32, #tpu.memory_space<vmem>>) attributes {dimension_semantics = [#tpu.dimension_semantics<arbitrary>], iteration_bounds = array<i64: 1>, scalar_prefetch = 0 : i64, scratch_operands = 0 : i64, tpu.core_type = #tpu.core_type<tc>, window_params = [{pipeline_mode = #tpu.pipeline_mode<synchronous>, transform_indices = @transform_0, window_bounds = array<i64: 16, 128>}, {pipeline_mode = #tpu.pipeline_mode<synchronous>, transform_indices = @transform_1, window_bounds = array<i64: 128, 256>}, {pipeline_mode = #tpu.pipeline_mode<synchronous>, transform_indices = @transform_2, window_bounds = array<i64: 3, 256>}, {pipeline_mode = #tpu.pipeline_mode<synchronous>, transform_indices = @transform_3, window_bounds = array<i64: 256, 256>}, {pipeline_mode = #tpu.pipeline_mode<synchronous>, transform_indices = @transform_4, window_bounds = array<i64: 3, 256>}, {pipeline_mode = #tpu.pipeline_mode<synchronous>, transform_indices = @transform_5, window_bounds = array<i64: 256, 128>}, {pipeline_mode = #tpu.pipeline_mode<synchronous>, transform_indices = @transform_6, window_bounds = array<i64: 1, 128>}, {pipeline_mode = #tpu.pipeline_mode<synchronous>, transform_indices = @transform_7, window_bounds = array<i64: 16, 128>}]} {
    %c0 = arith.constant 0 : index
    %c0_0 = arith.constant 0 : index
    %0 = vector.load %arg3[%c0, %c0_0] : memref<3x256xf32, #tpu.memory_space<vmem>>, vector<3x256xf32>
    %c0_1 = arith.constant 0 : index
    %c0_2 = arith.constant 0 : index
    %1 = vector.load %arg1[%c0_1, %c0_2] : memref<16x128xbf16, #tpu.memory_space<vmem>>, vector<16x128xbf16>
    %c0_3 = arith.constant 0 : index
    %c0_4 = arith.constant 0 : index
    %2 = vector.load %arg2[%c0_3, %c0_4] : memref<128x256xbf16, #tpu.memory_space<vmem>>, vector<128x256xbf16>
    %cst = arith.constant dense<0.000000e+00> : vector<16x256xf32>
    %3 = tpu.matmul %1, %2, %cst {dimension_numbers = #tpu.dot_dimension_numbers<[1], [0], [0], [1], [0, 0, 1, 1], [], []>} : vector<16x128xbf16>, vector<128x256xbf16>, vector<16x256xf32> -> vector<16x256xf32>
    %4 = vector.extract_strided_slice %0 {offsets = [0, 0], sizes = [1, 256], strides = [1, 1]} : vector<3x256xf32> to vector<1x256xf32>
    %5 = vector.broadcast %4 : vector<1x256xf32> to vector<16x256xf32>
    %6 = arith.addf %3, %5 : vector<16x256xf32>
    %7 = vector.extract_strided_slice %0 {offsets = [1, 0], sizes = [1, 256], strides = [1, 1]} : vector<3x256xf32> to vector<1x256xf32>
    %8 = vector.extract_strided_slice %0 {offsets = [2, 0], sizes = [1, 256], strides = [1, 1]} : vector<3x256xf32> to vector<1x256xf32>
    %9 = tpu.iota {dimensions = array<i32: 0>} : vector<16x256xi32>
    %c12_i32 = arith.constant 12 : i32
    %10 = vector.broadcast %c12_i32 : i32 to vector<16x256xi32>
    %11 = arith.cmpi slt, %9, %10 : vector<16x256xi32>
    %cst_5 = arith.constant 0.000000e+00 : f32
    %12 = vector.broadcast %cst_5 : f32 to vector<16x256xf32>
    %13 = arith.select %11, %6, %12 : vector<16x256xi1>, vector<16x256xf32>
    %cst_6 = arith.constant dense<0.000000e+00> : vector<256xf32>
    %14 = vector.multi_reduction <add>, %13, %cst_6 [0] : vector<16x256xf32> to vector<256xf32>
    %15 = vector.shape_cast %14 : vector<256xf32> to vector<1x256xf32>
    %16 = arith.mulf %13, %13 : vector<16x256xf32>
    %cst_7 = arith.constant dense<0.000000e+00> : vector<256xf32>
    %17 = vector.multi_reduction <add>, %16, %cst_7 [0] : vector<16x256xf32> to vector<256xf32>
    %18 = vector.shape_cast %17 : vector<256xf32> to vector<1x256xf32>
    %cst_8 = arith.constant 0.0833333358 : f32
    %19 = vector.broadcast %cst_8 : f32 to vector<1x256xf32>
    %20 = arith.mulf %15, %19 : vector<1x256xf32>
    %cst_9 = arith.constant 0.0833333358 : f32
    %21 = vector.broadcast %cst_9 : f32 to vector<1x256xf32>
    %22 = arith.mulf %18, %21 : vector<1x256xf32>
    %23 = arith.mulf %20, %20 : vector<1x256xf32>
    %24 = arith.subf %22, %23 : vector<1x256xf32>
    %cst_10 = arith.constant 0.000000e+00 : f32
    %25 = vector.broadcast %cst_10 : f32 to vector<1x256xf32>
    %26 = arith.maximumf %24, %25 : vector<1x256xf32>
    %27 = vector.broadcast %20 : vector<1x256xf32> to vector<16x256xf32>
    %28 = arith.subf %6, %27 : vector<16x256xf32>
    %cst_11 = arith.constant 9.99999974E-6 : f32
    %29 = vector.broadcast %cst_11 : f32 to vector<1x256xf32>
    %30 = arith.addf %26, %29 : vector<1x256xf32>
    %31 = math.rsqrt %30 : vector<1x256xf32>
    %32 = vector.broadcast %31 : vector<1x256xf32> to vector<16x256xf32>
    %33 = arith.mulf %28, %32 : vector<16x256xf32>
    %34 = vector.broadcast %7 : vector<1x256xf32> to vector<16x256xf32>
    %35 = arith.mulf %33, %34 : vector<16x256xf32>
    %36 = vector.broadcast %8 : vector<1x256xf32> to vector<16x256xf32>
    %37 = arith.addf %35, %36 : vector<16x256xf32>
    %cst_12 = arith.constant 0.000000e+00 : f32
    %38 = vector.broadcast %cst_12 : f32 to vector<16x256xf32>
    %39 = arith.cmpf oge, %37, %38 : vector<16x256xf32>
    %cst_13 = arith.constant 0.00999999977 : f32
    %40 = vector.broadcast %cst_13 : f32 to vector<16x256xf32>
    %41 = arith.mulf %40, %37 : vector<16x256xf32>
    %42 = arith.select %39, %37, %41 : vector<16x256xi1>, vector<16x256xf32>
    %c0_14 = arith.constant 0 : index
    %c0_15 = arith.constant 0 : index
    %43 = vector.load %arg5[%c0_14, %c0_15] : memref<3x256xf32, #tpu.memory_space<vmem>>, vector<3x256xf32>
    %44 = arith.truncf %42 : vector<16x256xf32> to vector<16x256xbf16>
    %c0_16 = arith.constant 0 : index
    %c0_17 = arith.constant 0 : index
    %45 = vector.load %arg4[%c0_16, %c0_17] : memref<256x256xbf16, #tpu.memory_space<vmem>>, vector<256x256xbf16>
    %cst_18 = arith.constant dense<0.000000e+00> : vector<16x256xf32>
    %46 = tpu.matmul %44, %45, %cst_18 {dimension_numbers = #tpu.dot_dimension_numbers<[1], [0], [0], [1], [0, 0, 1, 1], [], []>} : vector<16x256xbf16>, vector<256x256xbf16>, vector<16x256xf32> -> vector<16x256xf32>
    %47 = vector.extract_strided_slice %43 {offsets = [0, 0], sizes = [1, 256], strides = [1, 1]} : vector<3x256xf32> to vector<1x256xf32>
    %48 = vector.broadcast %47 : vector<1x256xf32> to vector<16x256xf32>
    %49 = arith.addf %46, %48 : vector<16x256xf32>
    %50 = vector.extract_strided_slice %43 {offsets = [1, 0], sizes = [1, 256], strides = [1, 1]} : vector<3x256xf32> to vector<1x256xf32>
    %51 = vector.extract_strided_slice %43 {offsets = [2, 0], sizes = [1, 256], strides = [1, 1]} : vector<3x256xf32> to vector<1x256xf32>
    %52 = tpu.iota {dimensions = array<i32: 0>} : vector<16x256xi32>
    %c12_i32_19 = arith.constant 12 : i32
    %53 = vector.broadcast %c12_i32_19 : i32 to vector<16x256xi32>
    %54 = arith.cmpi slt, %52, %53 : vector<16x256xi32>
    %cst_20 = arith.constant 0.000000e+00 : f32
    %55 = vector.broadcast %cst_20 : f32 to vector<16x256xf32>
    %56 = arith.select %54, %49, %55 : vector<16x256xi1>, vector<16x256xf32>
    %cst_21 = arith.constant dense<0.000000e+00> : vector<256xf32>
    %57 = vector.multi_reduction <add>, %56, %cst_21 [0] : vector<16x256xf32> to vector<256xf32>
    %58 = vector.shape_cast %57 : vector<256xf32> to vector<1x256xf32>
    %59 = arith.mulf %56, %56 : vector<16x256xf32>
    %cst_22 = arith.constant dense<0.000000e+00> : vector<256xf32>
    %60 = vector.multi_reduction <add>, %59, %cst_22 [0] : vector<16x256xf32> to vector<256xf32>
    %61 = vector.shape_cast %60 : vector<256xf32> to vector<1x256xf32>
    %cst_23 = arith.constant 0.0833333358 : f32
    %62 = vector.broadcast %cst_23 : f32 to vector<1x256xf32>
    %63 = arith.mulf %58, %62 : vector<1x256xf32>
    %cst_24 = arith.constant 0.0833333358 : f32
    %64 = vector.broadcast %cst_24 : f32 to vector<1x256xf32>
    %65 = arith.mulf %61, %64 : vector<1x256xf32>
    %66 = arith.mulf %63, %63 : vector<1x256xf32>
    %67 = arith.subf %65, %66 : vector<1x256xf32>
    %cst_25 = arith.constant 0.000000e+00 : f32
    %68 = vector.broadcast %cst_25 : f32 to vector<1x256xf32>
    %69 = arith.maximumf %67, %68 : vector<1x256xf32>
    %70 = vector.broadcast %63 : vector<1x256xf32> to vector<16x256xf32>
    %71 = arith.subf %49, %70 : vector<16x256xf32>
    %cst_26 = arith.constant 9.99999974E-6 : f32
    %72 = vector.broadcast %cst_26 : f32 to vector<1x256xf32>
    %73 = arith.addf %69, %72 : vector<1x256xf32>
    %74 = math.rsqrt %73 : vector<1x256xf32>
    %75 = vector.broadcast %74 : vector<1x256xf32> to vector<16x256xf32>
    %76 = arith.mulf %71, %75 : vector<16x256xf32>
    %77 = vector.broadcast %50 : vector<1x256xf32> to vector<16x256xf32>
    %78 = arith.mulf %76, %77 : vector<16x256xf32>
    %79 = vector.broadcast %51 : vector<1x256xf32> to vector<16x256xf32>
    %80 = arith.addf %78, %79 : vector<16x256xf32>
    %cst_27 = arith.constant 0.000000e+00 : f32
    %81 = vector.broadcast %cst_27 : f32 to vector<16x256xf32>
    %82 = arith.cmpf oge, %80, %81 : vector<16x256xf32>
    %cst_28 = arith.constant 0.00999999977 : f32
    %83 = vector.broadcast %cst_28 : f32 to vector<16x256xf32>
    %84 = arith.mulf %83, %80 : vector<16x256xf32>
    %85 = arith.select %82, %80, %84 : vector<16x256xi1>, vector<16x256xf32>
    %86 = arith.truncf %85 : vector<16x256xf32> to vector<16x256xbf16>
    %c0_29 = arith.constant 0 : index
    %c0_30 = arith.constant 0 : index
    %87 = vector.load %arg6[%c0_29, %c0_30] : memref<256x128xbf16, #tpu.memory_space<vmem>>, vector<256x128xbf16>
    %cst_31 = arith.constant dense<0.000000e+00> : vector<16x128xf32>
    %88 = tpu.matmul %86, %87, %cst_31 {dimension_numbers = #tpu.dot_dimension_numbers<[1], [0], [0], [1], [0, 0, 1, 1], [], []>} : vector<16x256xbf16>, vector<256x128xbf16>, vector<16x128xf32> -> vector<16x128xf32>
    %c0_32 = arith.constant 0 : index
    %c0_33 = arith.constant 0 : index
    %89 = vector.load %arg7[%c0_32, %c0_33] : memref<1x128xf32, #tpu.memory_space<vmem>>, vector<1x128xf32>
    %90 = vector.broadcast %89 : vector<1x128xf32> to vector<16x128xf32>
    %91 = arith.addf %88, %90 : vector<16x128xf32>
    %c0_34 = arith.constant 0 : index
    %c0_35 = arith.constant 0 : index
    %92 = vector.load %arg8[%c0_34, %c0_35] : memref<16x128xf32, #tpu.memory_space<vmem>>, vector<16x128xf32>
    tpu.vector_store %arg8[%c0_34, %c0_35], %91 {strides = array<i32>} : memref<16x128xf32, #tpu.memory_space<vmem>>, vector<16x128xf32>,
    return
  }
  func.func @transform_0(%arg0: i32) -> (i32, i32) {
    %c0_i32 = arith.constant 0 : i32
    %c0_i32_0 = arith.constant 0 : i32
    %c0_i32_1 = arith.constant 0 : i32
    return %c0_i32, %c0_i32_0 : i32, i32
  }
  func.func @transform_1(%arg0: i32) -> (i32, i32) {
    %c0_i32 = arith.constant 0 : i32
    %c0_i32_0 = arith.constant 0 : i32
    %c0_i32_1 = arith.constant 0 : i32
    return %c0_i32, %c0_i32_0 : i32, i32
  }
  func.func @transform_2(%arg0: i32) -> (i32, i32) {
    %c0_i32 = arith.constant 0 : i32
    %c0_i32_0 = arith.constant 0 : i32
    %c0_i32_1 = arith.constant 0 : i32
    return %c0_i32, %c0_i32_0 : i32, i32
  }
  func.func @transform_3(%arg0: i32) -> (i32, i32) {
    %c0_i32 = arith.constant 0 : i32
    %c0_i32_0 = arith.constant 0 : i32
    %c0_i32_1 = arith.constant 0 : i32
    return %c0_i32, %c0_i32_0 : i32, i32
  }
  func.func @transform_4(%arg0: i32) -> (i32, i32) {
    %c0_i32 = arith.constant 0 : i32
    %c0_i32_0 = arith.constant 0 : i32
    %c0_i32_1 = arith.constant 0 : i32
    return %c0_i32, %c0_i32_0 : i32, i32
  }
  func.func @transform_5(%arg0: i32) -> (i32, i32) {
    %c0_i32 = arith.constant 0 : i32
    %c0_i32_0 = arith.constant 0 : i32
    %c0_i32_1 = arith.constant 0 : i32
    return %c0_i32, %c0_i32_0 : i32, i32
  }
  func.func @transform_6(%arg0: i32) -> (i32, i32) {
    %c0_i32 = arith.constant 0 : i32
    %c0_i32_0 = arith.constant 0 : i32
    %c0_i32_1 = arith.constant 0 : i32
    return %c0_i32, %c0_i32_0 : i32, i32
  }
  func.func @transform_7(%arg0: i32) -> (i32, i32) {
    %c0_i32 = arith.constant 0 : i32
    %c0_i32_0 = arith.constant 0 : i32
    %c0_i32_1 = arith.constant 0 : i32
    return %c0_i32, %c0_i32_0 : i32, i32
  }
}

</mosaic_0001>

<bundles_post_ra>
// kernel: tpu_custom_call.1
= control target key start
LH: loop header
LB: loop body
LE: loop exit
PB: predicated region body
PF: predicated region fallthrough
CT: control target
= control target key end

     0   :  { %12 = vsyncpa [#allocation3], 0  ;;  %s1542_s0 = inlined_call_operand.hbm [shape: bf16[16,128], index: 0, kind: input, shape index: {}]   ;;  %s1543_s1 = inlined_call_operand.hbm [shape: bf16[128,256], index: 1, kind: input, shape index: {}]   ;;  %s1544_s2 = inlined_call_operand.hbm [shape: f32[3,256], index: 2, kind: input, shape index: {}]   ;;  %s1545_s3 = inlined_call_operand.hbm [shape: bf16[256,256], index: 3, kind: input, shape index: {}]   ;;  %s1546_s4 = inlined_call_operand.vmem [shape: f32[3,256], index: 4, kind: input, shape index: {}]   ;;  %s1547_s5 = inlined_call_operand.hbm [shape: bf16[256,128], index: 5, kind: input, shape index: {}]   ;;  %s1548_s6 = inlined_call_operand.vmem [shape: f32[1,128], index: 6, kind: input, shape index: {}]   ;;  %s1549_s7 = inlined_call_operand.hbm [shape: f32[16,128], index: 7, kind: output, shape index: {}]  }
   0x1   :  { %13 = vsyncpa [#allocation6], 0 }
   0x2   :  { %14 = vsyncpa [#allocation9], 0 }
   0x3   :  { %15 = vsyncpa [#allocation4], 0  ;;  %s1286_s24 = smov [#allocation5]   ;;  %s1146_s28 = scalar_lea.hbm %s1543_s1, 2048 }
   0x4   :  { %s33_s25 = sshll.u32 %s1286_s24, 4  ;;  %p1147_p0 = scmp.ne.s32.totalorder %s1543_s1, %s1146_s28  ;;  %s34_s25 = int_to_ptr.vmem [resolvable:$true] %s33_s25 }
   0x5   :  { %p1150_p1 = scmp.lt.u32.totalorder %s1146_s28, %s1543_s1 }
   0x7   :  { %p1152_p2 = pnand %p1150_p1, %p1147_p0 }
   0x9   :  { %1155 = shalt.err (!%p1152_p2)
}
   0xa   :  { %s1156_s10 = scalar_lea.vmem %s34_s25, 2048  ;;  %p1161_p4 = scmp.lt.s32.totalorder %s34_s25, %s34_s25 }
   0xb   :  { %p1157_p3 = scmp.ne.s32.totalorder %s34_s25, %s1156_s10  ;;  %p1162_p5 = scmp.lt.s32.totalorder %s1156_s10, %s1156_s10 }
   0xd   :  { %p1163_p6 = por %p1162_p5, %p1161_p4 }
   0xf   :  { %p1164_p7 = pnand %p1163_p6, %p1157_p3 }
  0x11   :  { %1167 = shalt.err (!%p1164_p7)
}
  0x12   :  { %s1287_s11 = smov 128   ;;  %s1288_s12 = smov 8  }
  0x13   :  { %39 = dma.hbm_to_vmem [thread:$0]  %s1543_s1, 2048, %s34_s25, [#allocation6], %s1287_s11, %s1287_s11, %s1288_s12  }
  0x14   :  { %s1289_s15 = smov [#allocation8]   ;;  %s1290_s17 = smov [#allocation2]  }
  0x15   :  { %s55_s16 = sshll.u32 %s1289_s15, 4  ;;  %s21_s18 = sshll.u32 %s1290_s17, 4  ;;  %s56_s16 = int_to_ptr.vmem [resolvable:$true] %s55_s16  ;;  %s22_s18 = int_to_ptr.vmem [resolvable:$true] %s21_s18 }
  0x16   :  { %s1168_s21 = scalar_lea.hbm %s1545_s3, 4096 }
  0x17   :  { %p1169_p8 = scmp.ne.s32.totalorder %s1545_s3, %s1168_s21  ;;  %p1172_p9 = scmp.lt.u32.totalorder %s1168_s21, %s1545_s3 }
  0x19   :  { %p1174_p10 = pnand %p1172_p9, %p1169_p8 }
  0x1b   :  { %1177 = shalt.err (!%p1174_p10)
}
  0x1c   :  { %s1178_s1 = scalar_lea.vmem %s56_s16, 4096  ;;  %p1183_p12 = scmp.lt.s32.totalorder %s56_s16, %s56_s16 }
  0x1d   :  { %p1179_p11 = scmp.ne.s32.totalorder %s56_s16, %s1178_s1  ;;  %p1184_p13 = scmp.lt.s32.totalorder %s1178_s1, %s1178_s1 }
  0x1f   :  { %p1185_p0 = por %p1184_p13, %p1183_p12 }
  0x21   :  { %p1186_p1 = pnand %p1185_p0, %p1179_p11 }
  0x23   :  { %1189 = shalt.err (!%p1186_p1)
}
  0x24   :  { %61 = dma.hbm_to_vmem [thread:$0]  %s1545_s3, 4096, %s56_s16, [#allocation9], %s1287_s11, %s1287_s11, %s1288_s12  }
  0x25   :  { %s1190_s30 = scalar_lea.hbm %s1542_s0, 128 }
  0x26   :  { %p1191_p2 = scmp.ne.s32.totalorder %s1542_s0, %s1190_s30  ;;  %p1194_p3 = scmp.lt.u32.totalorder %s1190_s30, %s1542_s0 }
  0x28   :  { %p1196_p4 = pnand %p1194_p3, %p1191_p2 }
  0x2a   :  { %1199 = shalt.err (!%p1196_p4)
}
  0x2b   :  { %s1200_s14 = scalar_lea.vmem %s22_s18, 128  ;;  %p1205_p6 = scmp.lt.s32.totalorder %s22_s18, %s22_s18 }
  0x2c   :  { %p1201_p5 = scmp.ne.s32.totalorder %s22_s18, %s1200_s14  ;;  %p1206_p7 = scmp.lt.s32.totalorder %s1200_s14, %s1200_s14 }
  0x2e   :  { %p1207_p8 = por %p1206_p7, %p1205_p6 }
  0x30   :  { %p1208_p9 = pnand %p1207_p8, %p1201_p5 }
  0x32   :  { %1211 = shalt.err (!%p1208_p9)
}
  0x33   :  { %s1291_s3 = smov 64   ;;  %s1292_s15 = smov 4  }
  0x34   :  { %27 = dma.hbm_to_vmem [thread:$0]  %s1542_s0, 128, %s22_s18, [#allocation3], %s1291_s3, %s1291_s3, %s1292_s15  }
  0x35   :  { %s1293_s19 = smov [#allocation7]   ;;  %s1294_s21 = smov [#allocation10]  }
  0x36   :  { %s46_s20 = sshll.u32 %s1293_s19, 4  ;;  %s69_s22 = sshll.u32 %s1294_s21, 4  ;;  %s47_s20 = int_to_ptr.vmem [resolvable:$true] %s46_s20  ;;  %s70_s22 = int_to_ptr.vmem [resolvable:$true] %s69_s22 }
  0x37   :  { %s1212_s26 = scalar_lea.hbm %s1544_s2, 128 }
  0x38   :  { %p1213_p10 = scmp.ne.s32.totalorder %s1544_s2, %s1212_s26  ;;  %p1216_p11 = scmp.lt.u32.totalorder %s1212_s26, %s1544_s2 }
  0x3a   :  { %p1218_p12 = pnand %p1216_p11, %p1213_p10 }
  0x3c   :  { %1221 = shalt.err (!%p1218_p12)
}
  0x3d   :  { %s1222_s0 = scalar_lea.vmem %s47_s20, 128  ;;  %p1227_p0 = scmp.lt.s32.totalorder %s47_s20, %s47_s20 }
  0x3e   :  { %p1223_p13 = scmp.ne.s32.totalorder %s47_s20, %s1222_s0  ;;  %p1228_p1 = scmp.lt.s32.totalorder %s1222_s0, %s1222_s0 }
  0x40   :  { %p1229_p2 = por %p1228_p1, %p1227_p0 }
  0x42   :  { %p1230_p3 = pnand %p1229_p2, %p1223_p13 }
  0x44   :  { %1233 = shalt.err (!%p1230_p3)
}
  0x45   :  { %49 = dma.hbm_to_vmem [thread:$0]  %s1544_s2, 128, %s47_s20, [#allocation6]  }
  0x46   :  { %s1234_s9 = scalar_lea.hbm %s1547_s5, 2048 }
  0x47   :  { %p1235_p4 = scmp.ne.s32.totalorder %s1547_s5, %s1234_s9  ;;  %p1238_p5 = scmp.lt.u32.totalorder %s1234_s9, %s1547_s5 }
  0x49   :  { %p1240_p6 = pnand %p1238_p5, %p1235_p4 }
  0x4b   :  { %1243 = shalt.err (!%p1240_p6)
}
  0x4c   :  { %s1244_s17 = scalar_lea.vmem %s70_s22, 2048  ;;  %p1249_p8 = scmp.lt.s32.totalorder %s70_s22, %s70_s22 }
  0x4d   :  { %p1245_p7 = scmp.ne.s32.totalorder %s70_s22, %s1244_s17  ;;  %p1250_p9 = scmp.lt.s32.totalorder %s1244_s17, %s1244_s17 }
  0x4f   :  { %p1251_p10 = por %p1250_p9, %p1249_p8 }
  0x51   :  { %p1252_p11 = pnand %p1251_p10, %p1245_p7 }
  0x53   :  { %1255 = shalt.err (!%p1252_p11)
}
  0x54   :  { %75 = dma.hbm_to_vmem [thread:$0]  %s1547_s5, 2048, %s70_s22, [#allocation9], %s1291_s3, %s1291_s3, %s1292_s15  }
  0x55   :  { %1278 = dma.done.wait [#allocation3], 128  }
  0x56   :  { %1279 = vsyncadd [#allocation3], 4294967168 }
  0x57   :  { %1280 = dma.done.wait [#allocation6], 2176  }
  0x58   :  { %1281 = vsyncadd [#allocation6], 4294965120 }
  0x59   :  { %1282 = dma.done.wait [#allocation9], 6144  }
  0x5a   :  { %1283 = vsyncadd [#allocation9], 4294961152  ;;  %v1295_v0 = vmov 0   ;;  %v1049_v1 = vld [vmem:[#allocation5 + $0x4] ss:$8 sps:$4 sm:$0xff]   ;;  %v1073_v23 = vld [vmem:[#allocation2] sm:$0xff]   ;;  %v114_v50 = vlaneseq }
  0x5b   :  { %250 = vmatprep.mubr.bf16.mxu0 %v1295_v0  ;;  %v1051_v2 = vld [vmem:[#allocation5] ss:$8 sps:$4 sm:$0xff]   ;;  %218 = vmatprep.subr.bf16.mxu0 %v1049_v1  ;;  %v1052_v3 = vld [vmem:[#allocation5 + $0x14] ss:$8 sps:$4 sm:$0xff]   ;;  %v1054_v4 = vld [vmem:[#allocation5 + $0x10] ss:$8 sps:$4 sm:$0xff]  }
  0x5c   :  { %219 = vmatpush1.bf16.msra.mxu0 %v1051_v2  ;;  %v1055_v5 = vld [vmem:[#allocation5 + $0x24] ss:$8 sps:$4 sm:$0xff]   ;;  %v1057_v6 = vld [vmem:[#allocation5 + $0x20] ss:$8 sps:$4 sm:$0xff]   ;;  %v1058_v7 = vld [vmem:[#allocation5 + $0x34] ss:$8 sps:$4 sm:$0xff]  }
  0x5d   :  { %220 = vmatprep.subr.bf16.mxu0 %v1052_v3  ;;  %v1060_v8 = vld [vmem:[#allocation5 + $0x30] ss:$8 sps:$4 sm:$0xff]   ;;  %v1061_v9 = vld [vmem:[#allocation5 + $0x44] ss:$8 sps:$4 sm:$0xff]   ;;  %v1063_v13 = vld [vmem:[#allocation5 + $0x40] ss:$8 sps:$4 sm:$0xff]  }
  0x5e   :  { %v1074_v10 = vld [vmem:[#allocation8 + $0x4] ss:$8 sps:$4 sm:$0xff]   ;;  %v1076_v11 = vld [vmem:[#allocation8] ss:$8 sps:$4 sm:$0xff]   ;;  %v1077_v12 = vld [vmem:[#allocation8 + $0x14] ss:$8 sps:$4 sm:$0xff]  }
  0x5f   :  { %594 = vmatprep.subr.bf16.mxu1 %v1074_v10  ;;  %v1064_v14 = vld [vmem:[#allocation5 + $0x54] ss:$8 sps:$4 sm:$0xff]   ;;  %v1079_v15 = vld [vmem:[#allocation8 + $0x10] ss:$8 sps:$4 sm:$0xff]   ;;  %v1082_v18 = vld [vmem:[#allocation8 + $0x20] ss:$8 sps:$4 sm:$0xff]  }
  0x60   :  { %221 = vmatpush1.bf16.msra.mxu0 %v1054_v4  ;;  %595 = vmatpush1.bf16.msra.mxu1 %v1076_v11  ;;  %v1080_v16 = vld [vmem:[#allocation8 + $0x24] ss:$8 sps:$4 sm:$0xff]   ;;  %v1066_v17 = vld [vmem:[#allocation5 + $0x50] ss:$8 sps:$4 sm:$0xff]   ;;  %v1069_v20 = vld [vmem:[#allocation5 + $0x60] ss:$8 sps:$4 sm:$0xff]  }
  0x61   :  { %222 = vmatprep.subr.bf16.mxu0 %v1055_v5  ;;  %596 = vmatprep.subr.bf16.mxu1 %v1077_v12  ;;  %v1067_v19 = vld [vmem:[#allocation5 + $0x64] ss:$8 sps:$4 sm:$0xff]   ;;  %v1070_v21 = vld [vmem:[#allocation5 + $0x74] ss:$8 sps:$4 sm:$0xff]   ;;  %v1072_v22 = vld [vmem:[#allocation5 + $0x70] ss:$8 sps:$4 sm:$0xff]  }
  0x62   :  { %v1083_v24 = vld [vmem:[#allocation8 + $0x34] ss:$8 sps:$4 sm:$0xff]   ;;  %v1085_v25 = vld [vmem:[#allocation8 + $0x30] ss:$8 sps:$4 sm:$0xff]   ;;  %v1086_v26 = vld [vmem:[#allocation8 + $0x44] ss:$8 sps:$4 sm:$0xff]  }
  0x63   :  { %v1088_v27 = vld [vmem:[#allocation8 + $0x40] ss:$8 sps:$4 sm:$0xff]   ;;  %v1089_v28 = vld [vmem:[#allocation8 + $0x54] ss:$8 sps:$4 sm:$0xff]   ;;  %v1091_v29 = vld [vmem:[#allocation8 + $0x50] ss:$8 sps:$4 sm:$0xff]  }
  0x64   :  { %223 = vmatpush1.bf16.msra.mxu0 %v1057_v6  ;;  %597 = vmatpush1.bf16.msra.mxu1 %v1079_v15  ;;  %v1092_v30 = vld [vmem:[#allocation8 + $0x64] ss:$8 sps:$4 sm:$0xff]   ;;  %v1094_v31 = vld [vmem:[#allocation8 + $0x60] ss:$8 sps:$4 sm:$0xff]   ;;  %v1095_v32 = vld [vmem:[#allocation8 + $0x74] ss:$8 sps:$4 sm:$0xff]  }
  0x65   :  { %224 = vmatprep.subr.bf16.mxu0 %v1058_v7  ;;  %598 = vmatprep.subr.bf16.mxu1 %v1080_v16  ;;  %v1097_v33 = vld [vmem:[#allocation8 + $0x70] ss:$8 sps:$4 sm:$0xff]   ;;  %v1098_v34 = vld [vmem:[#allocation8 + $0x84] ss:$8 sps:$4 sm:$0xff]   ;;  %v1100_v35 = vld [vmem:[#allocation8 + $0x80] ss:$8 sps:$4 sm:$0xff]  }
  0x66   :  { %v1101_v36 = vld [vmem:[#allocation8 + $0x94] ss:$8 sps:$4 sm:$0xff]   ;;  %v1103_v37 = vld [vmem:[#allocation8 + $0x90] ss:$8 sps:$4 sm:$0xff]   ;;  %v1104_v38 = vld [vmem:[#allocation8 + $0xa4] ss:$8 sps:$4 sm:$0xff]  }
  0x67   :  { %v1106_v39 = vld [vmem:[#allocation8 + $0xa0] ss:$8 sps:$4 sm:$0xff]   ;;  %v1107_v40 = vld [vmem:[#allocation8 + $0xb4] ss:$8 sps:$4 sm:$0xff]   ;;  %v1109_v41 = vld [vmem:[#allocation8 + $0xb0] ss:$8 sps:$4 sm:$0xff]  }
  0x68   :  { %225 = vmatpush1.bf16.msra.mxu0 %v1060_v8  ;;  %599 = vmatpush1.bf16.msra.mxu1 %v1082_v18  ;;  %v1110_v42 = vld [vmem:[#allocation8 + $0xc4] ss:$8 sps:$4 sm:$0xff]   ;;  %v1112_v43 = vld [vmem:[#allocation8 + $0xc0] ss:$8 sps:$4 sm:$0xff]   ;;  %v1113_v44 = vld [vmem:[#allocation8 + $0xd4] ss:$8 sps:$4 sm:$0xff]  }
  0x69   :  { %226 = vmatprep.subr.bf16.mxu0 %v1061_v9  ;;  %600 = vmatprep.subr.bf16.mxu1 %v1083_v24  ;;  %v1115_v45 = vld [vmem:[#allocation8 + $0xd0] ss:$8 sps:$4 sm:$0xff]   ;;  %v1116_v46 = vld [vmem:[#allocation8 + $0xe4] ss:$8 sps:$4 sm:$0xff]   ;;  %v1118_v47 = vld [vmem:[#allocation8 + $0xe0] ss:$8 sps:$4 sm:$0xff]  }
  0x6a   :  { %v1119_v48 = vld [vmem:[#allocation8 + $0xf4] ss:$8 sps:$4 sm:$0xff]   ;;  %v1121_v49 = vld [vmem:[#allocation8 + $0xf0] ss:$8 sps:$4 sm:$0xff]   ;;  %v1409_v51 = vshrl.u32 %v114_v50, 7  ;;  %s1296_s20 = smov [#allocation11]  }
  0x6b   :  { %v1414_v53 = vld [vmem:[#allocation7] sm:$0x77]  ;;  %s936_s21 = sshll.u32 %s1296_s20, 4  ;;  %s937_s21 = int_to_ptr.vmem [resolvable:$true] %s936_s21 }
  0x6c   :  { %227 = vmatpush1.bf16.msra.mxu0 %v1063_v13  ;;  %601 = vmatpush1.bf16.msra.mxu1 %v1085_v25  ;;  %v1412_v52 = vsub.s32 0, %v1409_v51  ;;  %v120_v54 = vsub.s32 4, %v1409_v51  ;;  %v1424_v58 = vadd.s32 8, %v1409_v51  ;;  %s1256_s22 = scalar_lea.vmem %s937_s21, 256  ;;  %p1261_p13 = scmp.lt.s32.totalorder %s937_s21, %s937_s21 }
  0x6d   :  { %228 = vmatprep.subr.bf16.mxu0 %v1064_v14  ;;  %602 = vmatprep.subr.bf16.mxu1 %v1086_v26  ;;  %p1257_p12 = scmp.ne.s32.totalorder %s937_s21, %s1256_s22  ;;  %p1262_p0 = scmp.lt.s32.totalorder %s1256_s22, %s1256_s22 }
  0x6e   :  { %v117_v55 = vrot.slane %v1414_v53, %v1412_v52  ;;  %v121_v56 = vrot.slane %v1414_v53, %v120_v54  ;;  %vm265_vm0 = vcmp.lt.s32.totalorder %v1424_v58, 12 }
  0x6f   :  { %p1263_p1 = por %p1262_p0, %p1261_p13 }
  0x70   :  { %229 = vmatpush1.bf16.msra.mxu0 %v1066_v17  ;;  %603 = vmatpush1.bf16.msra.mxu1 %v1088_v27  ;;  %v127_v57 = vrot.slane %v117_v55, %v1412_v52  ;;  %v131_v59 = vrot.slane %v121_v56, %v1412_v52 }
  0x71   :  { %230 = vmatprep.subr.bf16.mxu0 %v1067_v19  ;;  %604 = vmatprep.subr.bf16.mxu1 %v1089_v28  ;;  %p1264_p2 = pnand %p1263_p1, %p1257_p12 }
  0x74   :  { %231 = vmatpush1.bf16.msra.mxu0 %v1069_v20  ;;  %605 = vmatpush1.bf16.msra.mxu1 %v1091_v29 }
  0x75   :  { %232 = vmatprep.subr.bf16.mxu0 %v1070_v21  ;;  %606 = vmatprep.subr.bf16.mxu1 %v1092_v30 }
  0x78   :  { %233 = vmatpush1.bf16.msra.mxu0 %v1072_v22  ;;  %607 = vmatpush1.bf16.msra.mxu1 %v1094_v31 }
  0x79   :  { %608 = vmatprep.subr.bf16.mxu1 %v1095_v32 }
  0x7b   :  { %251 = vmatmul.mubr.bf16.vlgmr.msra.gmra.mrb[0].mxu0 %v1073_v23 }
  0x7c   :  { %609 = vmatpush1.bf16.msra.mxu1 %v1097_v33 }
  0x7d   :  { %610 = vmatprep.subr.bf16.mxu1 %v1098_v34 }
  0x80   :  { %611 = vmatpush1.bf16.msra.mxu1 %v1100_v35 }
  0x81   :  { %612 = vmatprep.subr.bf16.mxu1 %v1101_v36 }
  0x84   :  { %613 = vmatpush1.bf16.msra.mxu1 %v1103_v37 }
  0x85   :  { %614 = vmatprep.subr.bf16.mxu1 %v1104_v38 }
  0x88   :  { %615 = vmatpush1.bf16.msra.mxu1 %v1106_v39 }
  0x89   :  { %616 = vmatprep.subr.bf16.mxu1 %v1107_v40 }
  0x8c   :  { %617 = vmatpush1.bf16.msra.mxu1 %v1109_v41 }
  0x8d   :  { %618 = vmatprep.subr.bf16.mxu1 %v1110_v42 }
  0x90   :  { %619 = vmatpush1.bf16.msra.mxu1 %v1112_v43 }
  0x91   :  { %620 = vmatprep.subr.bf16.mxu1 %v1113_v44 }
  0x94   :  { %621 = vmatpush1.bf16.msra.mxu1 %v1115_v45 }
  0x95   :  { %622 = vmatprep.subr.bf16.mxu1 %v1116_v46 }
  0x98   :  { %623 = vmatpush1.bf16.msra.mxu1 %v1118_v47 }
  0x99   :  { %624 = vmatprep.subr.bf16.mxu1 %v1119_v48 }
  0x9c   :  { %625 = vmatpush1.bf16.msra.mxu1 %v1121_v49 }
 0x14e   :  { %v252_v60 = vpop.f32.mrb[0].mxu0 }
 0x14f   :  { %v254_v61 = vpop.f32.mrb[1].mxu0  ;;  %v1427_v62 = vadd.f32 %v252_v60, %v127_v57  ;;  %v330_v60 = vsub.s32 5, %v1409_v51 }
 0x150   :  { %v256_v63 = vpop.f32.mrb[2].mxu0  ;;  %v1430_v0 = vadd.f32 %v254_v61, %v131_v59  ;;  %v1457_v61 = vsub.s32 2, %v1409_v51 }
 0x151   :  { %v1432_v1 = vadd.f32 %v256_v63, %v127_v57  ;;  %v258_v2 = vpop.f32.mrb[3].mxu0  ;;  %v284_v5 = vmul.f32 %v1427_v62, %v1427_v62 }
 0x152   :  { %v1434_v3 = vadd.f32 %v258_v2, %v131_v59  ;;  %v285_v9 = vmul.f32 %v1430_v0, %v1430_v0  ;;  %v1453_v59 = vsub.s32 1, %v1409_v51 }
 0x153   :  { %v268_v4 = vsel %vm265_vm0, %v1432_v1, 0.0 }
 0x154   :  { %v270_v6 = vadd.f32 %v268_v4, %v1427_v62  ;;  %v286_v7 = vmul.f32 %v268_v4, %v268_v4  ;;  %v269_v8 = vsel %vm265_vm0, %v1434_v3, 0.0  ;;  %v327_v63 = vrot.slane %v1414_v53, %v1453_v59 }
 0x155   :  { %v277_v10 = vadd.f32 %v269_v8, %v1430_v0  ;;  %v287_v11 = vmul.f32 %v269_v8, %v269_v8 }
 0x156   :  { %v271_v12 = vrot.slane %v270_v6, 4  ;;  %v288_v13 = vadd.f32 %v286_v7, %v284_v5 }
 0x157   :  { %v278_v14 = vrot.slane %v277_v10, 4  ;;  %v295_v15 = vadd.f32 %v287_v11, %v285_v9 }
 0x158   :  { %v272_v16 = vadd.f32 %v271_v12, %v270_v6  ;;  %v289_v17 = vrot.slane %v288_v13, 4 }
 0x159   :  { %v279_v18 = vadd.f32 %v278_v14, %v277_v10  ;;  %v296_v19 = vrot.slane %v295_v15, 4 }
 0x15a   :  { %v273_v20 = vrot.slane %v272_v16, 2  ;;  %v290_v21 = vadd.f32 %v289_v17, %v288_v13 }
 0x15b   :  { %v280_v22 = vrot.slane %v279_v18, 2  ;;  %v297_v23 = vadd.f32 %v296_v19, %v295_v15 }
 0x15c   :  { %v274_v24 = vadd.f32 %v273_v20, %v272_v16  ;;  %v291_v25 = vrot.slane %v290_v21, 2 }
 0x15d   :  { %v281_v26 = vadd.f32 %v280_v22, %v279_v18  ;;  %v298_v27 = vrot.slane %v297_v23, 2 }
 0x15e   :  { %v275_v28 = vrot.slane %v274_v24, 1  ;;  %v292_v29 = vadd.f32 %v291_v25, %v290_v21 }
 0x15f   :  { %v282_v30 = vrot.slane %v281_v26, 1  ;;  %v299_v31 = vadd.f32 %v298_v27, %v297_v23 }
 0x160   :  { %v276_v32 = vadd.f32 %v275_v28, %v274_v24  ;;  %v293_v33 = vrot.slane %v292_v29, 1 }
 0x161   :  { %v283_v34 = vadd.f32 %v282_v30, %v281_v26  ;;  %v300_v35 = vrot.slane %v299_v31, 1  ;;  %v1122_v30 = vld [vmem:[#allocation10 + $0x40] sm:$0xff]  }
 0x162   :  { %v294_v36 = vadd.f32 %v293_v33, %v292_v29  ;;  %v302_v37 = vmul.f32 0.083333336, %v276_v32  ;;  %1016 = vmatprep.subr.bf16.mxu0 %v1122_v30  ;;  %v1124_v32 = vld [vmem:[#allocation10 + $0x48] sm:$0xff]  }
 0x163   :  { %v301_v38 = vadd.f32 %v300_v35, %v299_v31  ;;  %v303_v39 = vmul.f32 0.083333336, %v283_v34  ;;  %v1123_v31 = vld [vmem:[#allocation10] sm:$0xff]   ;;  %v1125_v33 = vld [vmem:[#allocation10 + $0x8] sm:$0xff]   ;;  %v1126_v34 = vld [vmem:[#allocation10 + $0x50] sm:$0xff]  }
 0x164   :  { %v304_v40 = vmul.f32 0.083333336, %v294_v36  ;;  %v306_v41 = vmul.f32 %v302_v37, %v302_v37  ;;  %v312_v42 = vsub.f32 %v1427_v62, %v302_v37  ;;  %v314_v43 = vsub.f32 %v1432_v1, %v302_v37  ;;  %1017 = vmatpush3.bf16.msra.mxu0 %v1123_v31  ;;  %v1127_v35 = vld [vmem:[#allocation10 + $0x10] sm:$0xff]   ;;  %v1128_v36 = vld [vmem:[#allocation10 + $0x58] sm:$0xff]  }
 0x165   :  { %v305_v44 = vmul.f32 0.083333336, %v301_v38  ;;  %v307_v45 = vmul.f32 %v303_v39, %v303_v39  ;;  %v315_v46 = vsub.f32 %v1434_v3, %v303_v39  ;;  %v313_v47 = vsub.f32 %v1430_v0, %v303_v39  ;;  %1018 = vmatprep.subr.bf16.mxu0 %v1124_v32  ;;  %v1129_v37 = vld [vmem:[#allocation10 + $0x18] sm:$0xff]   ;;  %v1130_v38 = vld [vmem:[#allocation10 + $0x60] sm:$0xff]  }
 0x166   :  { %v308_v48 = vsub.f32 %v304_v40, %v306_v41  ;;  %v352_v62 = vsub.s32 6, %v1409_v51  ;;  %v331_v0 = vrot.slane %v1414_v53, %v330_v60  ;;  %v349_v1 = vrot.slane %v1414_v53, %v1457_v61  ;;  %v1131_v39 = vld [vmem:[#allocation10 + $0x20] sm:$0xff]   ;;  %v1132_v40 = vld [vmem:[#allocation10 + $0x68] sm:$0xff]  }
 0x167   :  { %v309_v49 = vsub.f32 %v305_v44, %v307_v45  ;;  %v337_v3 = vrot.slane %v327_v63, %v1453_v59  ;;  %v1133_v41 = vld [vmem:[#allocation10 + $0x28] sm:$0xff]   ;;  %v1136_v44 = vld [vmem:[#allocation10 + $0x78] sm:$0xff]  }
 0x168   :  { %v310_v50 = vmax.f32 %v308_v48, 0.0  ;;  %v353_v2 = vrot.slane %v1414_v53, %v352_v62  ;;  %v341_v5 = vrot.slane %v331_v0, %v1453_v59  ;;  %v359_v9 = vrot.slane %v349_v1, %v1457_v61  ;;  %1019 = vmatpush3.bf16.msra.mxu0 %v1125_v33  ;;  %v1137_v45 = vld [vmem:[#allocation10 + $0x38] sm:$0xff]  }
 0x169   :  { %v311_v55 = vmax.f32 %v309_v49, 0.0  ;;  %1020 = vmatprep.subr.bf16.mxu0 %v1126_v34 }
 0x16a   :  { %v316_v56 = vadd.f32 1e-05, %v310_v50  ;;  %v363_v12 = vrot.slane %v353_v2, %v1457_v61 }
 0x16b   :  { %v317_v57 = vadd.f32 1e-05, %v311_v55 }
 0x16c   :  { %1138 = vrsqrt.f32 %v316_v56  ;;  %1021 = vmatpush3.bf16.msra.mxu0 %v1127_v35 }
 0x16d   :  { %1140 = vrsqrt.f32 %v317_v57  ;;  %1022 = vmatprep.subr.bf16.mxu0 %v1128_v36 }
 0x170   :  { %1023 = vmatpush3.bf16.msra.mxu0 %v1129_v37 }
 0x171   :  { %1024 = vmatprep.subr.bf16.mxu0 %v1130_v38 }
 0x174   :  { %1025 = vmatpush3.bf16.msra.mxu0 %v1131_v39 }
 0x175   :  { %1026 = vmatprep.subr.bf16.mxu0 %v1132_v40 }
 0x176   :  { %v1139_v4 = vpop.eup %1138 }
 0x177   :  { %v1141_v6 = vpop.eup %1140  ;;  %v320_v7 = vmul.f32 %v1139_v4, %v312_v42  ;;  %v322_v8 = vmul.f32 %v1139_v4, %v314_v43  ;;  %v1134_v42 = vld [vmem:[#allocation10 + $0x70] sm:$0xff]  }
 0x178   :  { %v323_v10 = vmul.f32 %v1141_v6, %v315_v46  ;;  %v321_v11 = vmul.f32 %v1141_v6, %v313_v47  ;;  %1027 = vmatpush3.bf16.msra.mxu0 %v1133_v41  ;;  %v1135_v43 = vld [vmem:[#allocation10 + $0x30] sm:$0xff]  }
 0x179   :  { %v342_v13 = vmul.f32 %v337_v3, %v320_v7  ;;  %v344_v14 = vmul.f32 %v337_v3, %v322_v8  ;;  %1028 = vmatprep.subr.bf16.mxu0 %v1134_v42  ;;  %v1477_v46 = vld [vmem:[%s1546_s4] sm:$0x77] }
 0x17a   :  { %v345_v15 = vmul.f32 %v341_v5, %v323_v10  ;;  %v343_v16 = vmul.f32 %v341_v5, %v321_v11  ;;  %v419_v47 = vrot.slane %v1477_v46, %v1412_v52  ;;  %v423_v48 = vrot.slane %v1477_v46, %v120_v54 }
 0x17b   :  { %v366_v17 = vadd.f32 %v359_v9, %v344_v14  ;;  %v364_v53 = vadd.f32 %v359_v9, %v342_v13 }
 0x17c   :  { %v365_v18 = vadd.f32 %v363_v12, %v343_v16  ;;  %v367_v19 = vadd.f32 %v363_v12, %v345_v15  ;;  %1029 = vmatpush3.bf16.msra.mxu0 %v1135_v43  ;;  %v429_v49 = vrot.slane %v419_v47, %v1412_v52  ;;  %v433_v50 = vrot.slane %v423_v48, %v1412_v52 }
 0x17d   :  { %vm368_vm1 = vcmp.ge.f32.partialorder %v364_v53, 0.0  ;;  %vm370_vm2 = vcmp.ge.f32.partialorder %v366_v17, 0.0  ;;  %v372_v20 = vmul.f32 0.01, %v364_v53  ;;  %v374_v21 = vmul.f32 0.01, %v366_v17  ;;  %1030 = vmatprep.subr.bf16.mxu0 %v1136_v44 }
 0x17e   :  { %vm369_vm3 = vcmp.ge.f32.partialorder %v365_v18, 0.0  ;;  %vm371_vm4 = vcmp.ge.f32.partialorder %v367_v19, 0.0  ;;  %v373_v22 = vmul.f32 0.01, %v365_v18  ;;  %v375_v23 = vmul.f32 0.01, %v367_v19 }
 0x17f   :  { %v376_v24 = vsel %vm368_vm1, %v364_v53, %v372_v20  ;;  %v378_v25 = vsel %vm370_vm2, %v366_v17, %v374_v21 }
 0x180   :  { %v377_v26 = vsel %vm369_vm3, %v365_v18, %v373_v22  ;;  %v379_v27 = vsel %vm371_vm4, %v367_v19, %v375_v23  ;;  %v381_v28 = vpack.c.bf16 %v378_v25, %v376_v24  ;;  %1031 = vmatpush3.bf16.msra.mxu0 %v1137_v45 }
 0x181   :  { %v382_v29 = vpack.c.bf16 %v379_v27, %v377_v26 }
 0x183   :  { %626 = vmatprep.mubr.bf16.mxu1 %v382_v29 }
 0x184   :  { %627 = vmatmul.mubr.bf16.vlgmr.msra.gmra.mrb[0].mxu1 %v381_v28 }
 0x257   :  { %v628_v55 = vpop.f32.mrb[0].mxu1 }
 0x258   :  { %v630_v56 = vpop.f32.mrb[1].mxu1  ;;  %v1486_v57 = vadd.f32 %v628_v55, %v429_v49  ;;  %v698_v55 = vrot.slane %v1477_v46, %v1453_v59 }
 0x259   :  { %v632_v63 = vpop.f32.mrb[2].mxu1  ;;  %v1488_v0 = vadd.f32 %v630_v56, %v433_v50  ;;  %v702_v56 = vrot.slane %v1477_v46, %v330_v60 }
 0x25a   :  { %v1490_v1 = vadd.f32 %v632_v63, %v429_v49  ;;  %v634_v2 = vpop.f32.mrb[3].mxu1  ;;  %v655_v4 = vmul.f32 %v1486_v57, %v1486_v57  ;;  %v724_v63 = vrot.slane %v1477_v46, %v352_v62 }
 0x25b   :  { %v1492_v3 = vadd.f32 %v634_v2, %v433_v50  ;;  %v656_v7 = vmul.f32 %v1488_v0, %v1488_v0  ;;  %v712_v2 = vrot.slane %v702_v56, %v1453_v59 }
 0x25c   :  { %v639_v54 = vsel %vm265_vm0, %v1490_v1, 0.0  ;;  %v734_v60 = vrot.slane %v724_v63, %v1457_v61 }
 0x25d   :  { %v641_v52 = vadd.f32 %v639_v54, %v1486_v57  ;;  %v657_v5 = vmul.f32 %v639_v54, %v639_v54  ;;  %v640_v6 = vsel %vm265_vm0, %v1492_v3, 0.0 }
 0x25e   :  { %v648_v8 = vadd.f32 %v640_v6, %v1488_v0  ;;  %v658_v9 = vmul.f32 %v640_v6, %v640_v6 }
 0x25f   :  { %v642_v10 = vrot.slane %v641_v52, 4  ;;  %v659_v11 = vadd.f32 %v657_v5, %v655_v4 }
 0x260   :  { %v649_v12 = vrot.slane %v648_v8, 4  ;;  %v666_v13 = vadd.f32 %v658_v9, %v656_v7 }
 0x261   :  { %v643_v14 = vadd.f32 %v642_v10, %v641_v52  ;;  %v660_v15 = vrot.slane %v659_v11, 4 }
 0x262   :  { %v650_v16 = vadd.f32 %v649_v12, %v648_v8  ;;  %v667_v17 = vrot.slane %v666_v13, 4 }
 0x263   :  { %v644_v53 = vrot.slane %v643_v14, 2  ;;  %v661_v18 = vadd.f32 %v660_v15, %v659_v11 }
 0x264   :  { %v651_v19 = vrot.slane %v650_v16, 2  ;;  %v668_v20 = vadd.f32 %v667_v17, %v666_v13 }
 0x265   :  { %v645_v58 = vadd.f32 %v644_v53, %v643_v14  ;;  %v662_v21 = vrot.slane %v661_v18, 2 }
 0x266   :  { %v652_v22 = vadd.f32 %v651_v19, %v650_v16  ;;  %v669_v23 = vrot.slane %v668_v20, 2 }
 0x267   :  { %v646_v24 = vrot.slane %v645_v58, 1  ;;  %v663_v25 = vadd.f32 %v662_v21, %v661_v18 }
 0x268   :  { %v653_v26 = vrot.slane %v652_v22, 1  ;;  %v670_v27 = vadd.f32 %v669_v23, %v668_v20  ;;  %v999_v20 = vld [vmem:[%s1548_s6] ss:$0 sm:$0xff] }
 0x269   :  { %v647_v28 = vadd.f32 %v646_v24, %v645_v58  ;;  %v664_v29 = vrot.slane %v663_v25, 1 }
 0x26a   :  { %v654_v30 = vadd.f32 %v653_v26, %v652_v22  ;;  %v671_v31 = vrot.slane %v670_v27, 1 }
 0x26b   :  { %v665_v32 = vadd.f32 %v664_v29, %v663_v25  ;;  %v673_v33 = vmul.f32 0.083333336, %v647_v28 }
 0x26c   :  { %v672_v34 = vadd.f32 %v671_v31, %v670_v27  ;;  %v674_v35 = vmul.f32 0.083333336, %v654_v30 }
 0x26d   :  { %v675_v36 = vmul.f32 0.083333336, %v665_v32  ;;  %v677_v37 = vmul.f32 %v673_v33, %v673_v33  ;;  %v683_v38 = vsub.f32 %v1486_v57, %v673_v33  ;;  %v685_v39 = vsub.f32 %v1490_v1, %v673_v33 }
 0x26e   :  { %v676_v40 = vmul.f32 0.083333336, %v672_v34  ;;  %v678_v41 = vmul.f32 %v674_v35, %v674_v35  ;;  %v684_v42 = vsub.f32 %v1488_v0, %v674_v35  ;;  %v686_v43 = vsub.f32 %v1492_v3, %v674_v35 }
 0x26f   :  { %v679_v44 = vsub.f32 %v675_v36, %v677_v37  ;;  %v720_v57 = vrot.slane %v1477_v46, %v1457_v61  ;;  %v708_v0 = vrot.slane %v698_v55, %v1453_v59 }
 0x270   :  { %v680_v45 = vsub.f32 %v676_v40, %v678_v41 }
 0x271   :  { %v681_v47 = vmax.f32 %v679_v44, 0.0  ;;  %v730_v52 = vrot.slane %v720_v57, %v1457_v61 }
 0x272   :  { %v682_v48 = vmax.f32 %v680_v45, 0.0 }
 0x273   :  { %v687_v49 = vadd.f32 1e-05, %v681_v47 }
 0x274   :  { %v688_v50 = vadd.f32 1e-05, %v682_v48 }
 0x275   :  { %1142 = vrsqrt.f32 %v687_v49 }
 0x276   :  { %1144 = vrsqrt.f32 %v688_v50 }
 0x27f   :  { %v1143_v1 = vpop.eup %1142 }
 0x280   :  { %v1145_v3 = vpop.eup %1144  ;;  %v691_v54 = vmul.f32 %v1143_v1, %v683_v38  ;;  %v693_v4 = vmul.f32 %v1143_v1, %v685_v39 }
 0x281   :  { %v692_v5 = vmul.f32 %v1145_v3, %v684_v42  ;;  %v694_v6 = vmul.f32 %v1145_v3, %v686_v43 }
 0x282   :  { %v713_v7 = vmul.f32 %v708_v0, %v691_v54  ;;  %v715_v8 = vmul.f32 %v708_v0, %v693_v4 }
 0x283   :  { %v714_v9 = vmul.f32 %v712_v2, %v692_v5  ;;  %v716_v51 = vmul.f32 %v712_v2, %v694_v6 }
 0x284   :  { %v735_v10 = vadd.f32 %v730_v52, %v713_v7  ;;  %v737_v62 = vadd.f32 %v730_v52, %v715_v8 }
 0x285   :  { %v738_v46 = vadd.f32 %v734_v60, %v716_v51  ;;  %v736_v11 = vadd.f32 %v734_v60, %v714_v9 }
 0x286   :  { %vm739_vm5 = vcmp.ge.f32.partialorder %v735_v10, 0.0  ;;  %vm741_vm6 = vcmp.ge.f32.partialorder %v737_v62, 0.0  ;;  %v743_v59 = vmul.f32 0.01, %v735_v10  ;;  %v745_v12 = vmul.f32 0.01, %v737_v62 }
 0x287   :  { %vm740_vm7 = vcmp.ge.f32.partialorder %v736_v11, 0.0  ;;  %vm742_vm8 = vcmp.ge.f32.partialorder %v738_v46, 0.0  ;;  %v744_v13 = vmul.f32 0.01, %v736_v11  ;;  %v746_v14 = vmul.f32 0.01, %v738_v46 }
 0x288   :  { %v747_v15 = vsel %vm739_vm5, %v735_v10, %v743_v59  ;;  %v749_v16 = vsel %vm741_vm6, %v737_v62, %v745_v12 }
 0x289   :  { %v748_v17 = vsel %vm740_vm7, %v736_v11, %v744_v13  ;;  %v750_v61 = vsel %vm742_vm8, %v738_v46, %v746_v14  ;;  %v751_v53 = vpack.c.bf16 %v749_v16, %v747_v15 }
 0x28a   :  { %v752_v18 = vpack.c.bf16 %v750_v61, %v748_v17 }
 0x28c   :  { %920 = vmatprep.mubr.bf16.mxu0 %v752_v18 }
 0x28d   :  { %921 = vmatmul.mubr.bf16.vlgmr.msra.gmra.mrb[4].mxu0 %v751_v53 }
 0x360   :  { %v1032_v19 = vpop.f32.mrb[4].mxu0 }
 0x361   :  { %v1033_v58 = vpop.f32.mrb[5].mxu0 }
 0x362   :  { %v1034_v21 = vadd.f32 %v1033_v58, %v1032_v19  ;;  %v1035_v22 = vpop.f32.mrb[6].mxu0 }
 0x363   :  { %v1036_v23 = vpop.f32.mrb[7].mxu0 }
 0x364   :  { %v923_v24 = vadd.f32 %v1034_v21, %v999_v20  ;;  %v1037_v25 = vadd.f32 %v1036_v23, %v1035_v22 }
 0x366   :  { %929 = vst [vmem:[#allocation11] sm:$0xff] %v923_v24  ;;  %v926_v26 = vadd.f32 %v1037_v25, %v999_v20 }
 0x368   :  { %930 = vst [vmem:[#allocation11 + $0x8] sm:$0xff] %v926_v26 }
 0x369   :  { %1267 = shalt.err (!%p1264_p2)
}
 0x36a   :  { %s1268_s24 = scalar_lea.hbm %s1549_s7, 256 }
 0x36b   :  { %p1269_p3 = scmp.ne.s32.totalorder %s1549_s7, %s1268_s24  ;;  %p1272_p4 = scmp.lt.u32.totalorder %s1268_s24, %s1549_s7 }
 0x36d   :  { %p1274_p5 = pnand %p1272_p4, %p1269_p3 }
 0x36f   :  { %1277 = shalt.err (!%p1274_p5)
}
 0x370   :  { %942 = dma.vmem_to_hbm [thread:$0]  %s937_s21, 256, %s1549_s7, [#allocation4], %s1287_s11, %s1287_s11, %s1288_s12  }
 0x371   :  { %1284 = dma.done.wait [#allocation4], 256  }
 0x372   :  { %1285 = vsyncadd [#allocation4], 4294967040 }
 0x373   :  { %946 = vsyncpa [#allocation3], 1 }
 0x374   :  { %947 = vsyncpa [#allocation6], 1 }
 0x375   :  { %948 = vsyncpa [#allocation9], 1 }
 0x376   :  { %949 = vsyncpa [#allocation4], 1 }

</bundles_post_ra>
